<compile_context>
chip_gen: v7x
topology: tpu7x:2x2x1
jax: 0.10.0
libtpu: 0.0.40
codegen_flags: <defaults>
</compile_context>

<pallas_src>
import jax
import jax.numpy as jnp
from jax.experimental import pallas as pl
from jax.experimental.pallas import tpu as pltpu


def _noop_kernel(x_ref, o_ref):
    # True no-op: refs live in HBM (pl.ANY, no auto-DMA) and the output
    # aliases the input, so the data is already where it needs to be.
    del x_ref, o_ref


def _copy_kernel(x_ref, o_ref):
    # Whole-tile copy: load the current VMEM block and store it unchanged.
    o_ref[...] = x_ref[...]


def _sublane_multiple(dtype) -> int:
    # Packed-sublane minimum: 8 rows for 4-byte dtypes, 16 for 2-byte, 32 for 1-byte.
    itemsize = jnp.dtype(dtype).itemsize
    return max(8, 32 // max(1, itemsize))


def _clamped_vmem_limit(requested: int) -> int:
    # v7x has only 64 MiB physical VMEM per TensorCore; never request more
    # than half of whatever chip we are actually on.
    try:
        cap = getattr(pltpu.get_tpu_info(), "vmem_capacity_bytes", None)
    except Exception:
        cap = None
    if cap:
        return int(min(requested, cap // 2))
    return int(requested)


def _lane_dense_layout(n: int):
    # Largest L in {4096..128} (multiple of 128) that divides n -> (rows, L).
    for width in (4096, 2048, 1024, 512, 256, 128):
        if n % width == 0:
            return n // width, width
    return None


def notrans_forward(input_embd, *, alias_input=True, vmem_limit_bytes=64 << 20):
    """Identity forward pass with a Pallas kernel boundary."""
    orig_shape = input_embd.shape
    dtype = input_embd.dtype
    vmem_limit_bytes = _clamped_vmem_limit(vmem_limit_bytes)

    if alias_input:
        # No-op body: zero in-kernel data movement.  Donated input -> no HBM
        # traffic at all; non-donated input -> a single XLA defensive copy.
        return pl.pallas_call(
            _noop_kernel,
            out_shape=jax.ShapeDtypeStruct(orig_shape, dtype),
            in_specs=[pl.BlockSpec(memory_space=pl.ANY)],
            out_specs=pl.BlockSpec(memory_space=pl.ANY),
            input_output_aliases={0: 0},
        )(input_embd)

    # ---- Fallback: explicit VMEM-staged copy (no aliasing requested). ----
    itemsize = jnp.dtype(dtype).itemsize
    sub = _sublane_multiple(dtype)
    n = 1
    for d in orig_shape:
        n *= int(d)
    n = max(n, 1)

    layout = _lane_dense_layout(n)
    if layout is not None:
        # Lane-dense slab: last dim is a large multiple of 128, so stores are
        # unmasked full-width vst's even if the original last dim was < 128
        # (or the input was 1-D).
        rows, width = layout
        x2d = input_embd.reshape(rows, width)
    else:
        # Total size not a multiple of 128: keep the original last dim as the
        # lane axis (block equal to the full dim is always legal).
        if input_embd.ndim <= 1:
            x2d = input_embd.reshape(1, -1)
        else:
            x2d = input_embd.reshape(-1, orig_shape[-1])
        rows, width = x2d.shape

    # Per-buffer tile budget: ~1-2 MiB already reaches ~85%+ of the HBM
    # roofline; larger tiles only lengthen fill/drain and eat VMEM headroom
    # (which matters on v7x's 64 MiB).
    per_buffer_bytes = max(min(2 << 20, vmem_limit_bytes // 8),
                           sub * width * itemsize)
    if rows <= sub:
        tile_rows = rows  # full array dim: always a legal block shape
    else:
        rows_by_budget = per_buffer_bytes // max(1, width * itemsize)
        rows_by_budget = max(sub, (rows_by_budget // sub) * sub)
        tile_rows = int(min(rows_by_budget, (rows // sub) * sub))

    # Headroom above the 4 live tiles (in + out, double-buffered).
    tile_bytes = tile_rows * width * itemsize
    vmem_budget = max(vmem_limit_bytes, 6 * tile_bytes)

    out = pl.pallas_call(
        _copy_kernel,
        out_shape=jax.ShapeDtypeStruct((rows, width), dtype),
        grid_spec=pl.GridSpec(
            grid=(pl.cdiv(rows, tile_rows),),
            in_specs=[pl.BlockSpec((tile_rows, width), lambda i: (i, 0))],
            out_specs=pl.BlockSpec((tile_rows, width), lambda i: (i, 0)),
        ),
        compiler_params=pltpu.CompilerParams(
            # Lets v7x shard the row grid across its 2 TensorCores (memory
            # bound, so sub-2x); neutral on single-TC v5e/v6e.
            dimension_semantics=("parallel",),
            vmem_limit_bytes=int(vmem_budget),
        ),
    )(x2d)

    return out.reshape(orig_shape)


if __name__ == "__main__":
    key = jax.random.PRNGKey(0)
    k1, k2, k3 = jax.random.split(key, 3)

    # Primary case: (seq=8, hidden=128) f32 through the aliased no-op path.
    x = jax.random.normal(k1, (8, 128), dtype=jnp.float32)
    y = jax.block_until_ready(notrans_forward(x))
    assert y.shape == x.shape and y.dtype == x.dtype
    assert bool(jnp.all(y == x))

    # 3-D input through the aliased path (no reshape plumbing needed at all).
    x3 = jax.random.normal(k2, (2, 8, 32), dtype=jnp.float32)
    y3 = jax.block_until_ready(notrans_forward(x3))
    assert y3.shape == x3.shape and y3.dtype == x3.dtype
    assert bool(jnp.all(y3 == x3))

    # Explicit-copy fallback: lane-dense retiling (512 elems -> (1, 512) slab).
    y3c = jax.block_until_ready(notrans_forward(x3, alias_input=False))
    assert y3c.shape == x3.shape and y3c.dtype == x3.dtype
    assert bool(jnp.all(y3c == x3))

    # Non-128-divisible total size exercises the (rows, last_dim) fallback.
    x_odd = jax.random.normal(k3, (3, 5, 7), dtype=jnp.float32)
    y_odd = jax.block_until_ready(notrans_forward(x_odd, alias_input=False))
    assert y_odd.shape == x_odd.shape and y_odd.dtype == x_odd.dtype
    assert bool(jnp.all(y_odd == x_odd))

    print("KERNEL_OK")
</pallas_src>

<mosaic_0001>
module attributes {stable_mosaic.version = 11 : i64} {
  func.func @_noop_kernel(%arg0: memref<8x128xf32, #tpu.memory_space<any>>, %arg1: memref<8x128xf32, #tpu.memory_space<any>>) attributes {dimension_semantics = [], scalar_prefetch = 0 : i64, scratch_operands = 0 : i64, tpu.core_type = #tpu.core_type<tc>} {
    return
  }
}

</mosaic_0001>

<bundles_post_ra>
// kernel: tpu_custom_call.1
= control target key start
LH: loop header
LB: loop body
LE: loop exit
PB: predicated region body
PF: predicated region fallthrough
CT: control target
= control target key end

     0   :  { %s16_s0 = inlined_call_operand.hbm [shape: f32[8,128], index: 0, kind: input, shape index: {}, may-alias: {0,1}]   ;;  %s17_s1 = inlined_call_operand.hbm [shape: f32[8,128], index: 1, kind: output, shape index: {}, may-alias: {0,1}]  }

</bundles_post_ra>
